<compile_context>
chip_gen: v7x
topology: tpu7x:2x2x1
jax: 0.10.0
libtpu: 0.0.40
codegen_flags: <defaults>
</compile_context>

<pallas_src>
import functools

import jax
import jax.numpy as jnp
from jax.experimental import pallas as pl
from jax.experimental.pallas import tpu as pltpu

DIMS = (4, 64, 128, 64, 32, 16, 2)
N_LAYERS = len(DIMS) - 1     # 6
PAD = 128                    # lane-dense width for every padded weight/activation dim
OUT_PAD = 8                  # narrow output block width (real logits live in lanes 0..1)
W_BLOCK_ROWS = 128           # layer i weight occupies rows [128*i, 128*(i+1)) of the slab
B_BLOCK_ROWS = 8             # layer i bias occupies row 8*i of the bias slab


def mlp_kernel(x_ref, w_ref, b_ref, out_ref):
    """One batch tile of the 6-layer MLP.

    x_ref   : [TB, 4]    f32        raw input features (no lane padding in HBM)
    w_ref   : [768, 128] f32/bf16   packed weights; layer i at rows [128*i, 128*(i+1))
                                    (rows beyond fan_in / lanes beyond fan_out are zero)
    b_ref   : [48, 128]  f32        packed biases; layer i bias in row 8*i
    out_ref : [TB, 8]    f32        narrow output block; real logits in lanes 0..1
    """
    w_dtype = w_ref.dtype
    x = x_ref[...]                                            # [TB, 4] f32

    # ---- Layer 1 (4 -> 64, padded to 128 lanes) on the VPU --------------------------
    # Only 4 input features: 4 rank-1 outer-product updates are cheaper than an MXU
    # pass and avoid a tiny-K matmul:  h = sum_j x[:, j] * W1[j, :]  + b1.
    h = x[:, 0:1] * w_ref[0:1, :].astype(jnp.float32)         # [TB,1]*[1,128] -> [TB,128]
    for j in range(1, DIMS[0]):
        h += x[:, j:j + 1] * w_ref[j:j + 1, :].astype(jnp.float32)
    h = jnp.maximum(h + b_ref[0:1, :], 0.0)

    # ---- Hidden layers 2..5 (128x128 padded blocks) on the MXU ----------------------
    for i in range(1, N_LAYERS - 1):
        w = w_ref[W_BLOCK_ROWS * i:W_BLOCK_ROWS * (i + 1), :]     # static aligned view
        b = b_ref[B_BLOCK_ROWS * i:B_BLOCK_ROWS * i + 1, :]       # [1, 128]
        h = jnp.dot(h.astype(w_dtype), w, preferred_element_type=jnp.float32) + b
        h = jnp.maximum(h, 0.0)                                   # ReLU

    # ---- Output layer (16 -> 2), no ReLU; store only the narrow lane block ----------
    i = N_LAYERS - 1
    w = w_ref[W_BLOCK_ROWS * i:W_BLOCK_ROWS * (i + 1), :]
    b = b_ref[B_BLOCK_ROWS * i:B_BLOCK_ROWS * i + 1, :]
    y = jnp.dot(h.astype(w_dtype), w, preferred_element_type=jnp.float32) + b
    out_ref[...] = y[:, :OUT_PAD].astype(out_ref.dtype)


def pack_params(params, param_dtype=jnp.float32):
    """Pack list of (W[in,out], b[out]) into one weight slab and one bias slab.

    Every weight is zero-padded to [128, 128]; every bias to an [8, 128] row-block
    (bias in row 0). All slab offsets are (8,128)-tile aligned, so the in-kernel
    slices are zero-cost views.
    """
    w_blocks, b_blocks = [], []
    for (w, b) in params:
        fan_in, fan_out = w.shape
        wp = jnp.zeros((W_BLOCK_ROWS, PAD), jnp.float32).at[:fan_in, :fan_out].set(w)
        bp = jnp.zeros((B_BLOCK_ROWS, PAD), jnp.float32).at[0, :fan_out].set(
            jnp.reshape(b, (-1,)))
        w_blocks.append(wp)
        b_blocks.append(bp)
    w_slab = jnp.concatenate(w_blocks, axis=0).astype(param_dtype)   # [768, 128]
    b_slab = jnp.concatenate(b_blocks, axis=0)                       # [48, 128], f32
    return w_slab, b_slab


@functools.partial(jax.jit, static_argnames=("block_b",))
def network_forward(x, w_slab, b_slab, *, block_b=1024):
    """x: [B, 4] float; returns [B, 2] float32 (same semantics as Network.forward)."""
    B, in_dim = x.shape
    # 8-aligned batch tile, capped at block_b; pad batch up to a multiple of the tile.
    tb = min(block_b, max(8, ((B + 7) // 8) * 8))
    b_pad = ((B + tb - 1) // tb) * tb
    xp = x.astype(jnp.float32)
    if b_pad != B:
        xp = jnp.zeros((b_pad, in_dim), jnp.float32).at[:B, :].set(xp)

    out = pl.pallas_call(
        mlp_kernel,
        out_shape=jax.ShapeDtypeStruct((b_pad, OUT_PAD), jnp.float32),
        grid=(b_pad // tb,),
        in_specs=[
            pl.BlockSpec((tb, in_dim), lambda i: (i, 0)),     # batch-tiled narrow input
            pl.BlockSpec(w_slab.shape, lambda i: (0, 0)),     # weights: VMEM-resident
            pl.BlockSpec(b_slab.shape, lambda i: (0, 0)),     # biases:  VMEM-resident
        ],
        out_specs=pl.BlockSpec((tb, OUT_PAD), lambda i: (i, 0)),   # narrow output block
        compiler_params=pltpu.CompilerParams(
            dimension_semantics=("parallel",)),               # shard batch across TCs
    )(xp, w_slab, b_slab)

    return out[:B, :DIMS[-1]]


def init_params(key):
    """Deterministic init mimicking torch.nn.Linear's uniform(-1/sqrt(fan_in), +)."""
    params = []
    for i in range(N_LAYERS):
        fan_in, fan_out = DIMS[i], DIMS[i + 1]
        key, kw, kb = jax.random.split(key, 3)
        bound = 1.0 / (fan_in ** 0.5)
        w = jax.random.uniform(kw, (fan_in, fan_out), jnp.float32, -bound, bound)
        b = jax.random.uniform(kb, (fan_out,), jnp.float32, -bound, bound)
        params.append((w, b))
    return params


def reference_forward(x, params):
    h = x
    for i, (w, b) in enumerate(params):
        h = h @ w + b
        if i < N_LAYERS - 1:
            h = jnp.maximum(h, 0.0)
    return h


if __name__ == "__main__":
    key = jax.random.PRNGKey(0)
    key, kx = jax.random.split(key)
    B = 8
    x = jax.random.normal(kx, (B, DIMS[0]), jnp.float32)
    params = init_params(key)
    ref = reference_forward(x, params)

    # f32 weights (default): same semantics as the PyTorch module.
    w32, b32 = pack_params(params, jnp.float32)
    out32 = jax.block_until_ready(network_forward(x, w32, b32))
    assert out32.shape == (B, DIMS[-1]), out32.shape
    assert jnp.allclose(out32, ref, atol=1e-5, rtol=1e-5), "f32 mismatch vs reference"

    # bf16 weight slab (v6e/v7x MXU throughput option); f32 accumulate, looser check.
    wbf, bbf = pack_params(params, jnp.bfloat16)
    outbf = jax.block_until_ready(network_forward(x, wbf, bbf))
    assert jnp.allclose(outbf, ref, atol=5e-2, rtol=5e-2), "bf16 mismatch vs reference"

    # Larger, non-multiple batch: exercises the batch grid + tail padding path.
    key, kx2 = jax.random.split(key)
    B2 = 3000
    x2 = jax.random.normal(kx2, (B2, DIMS[0]), jnp.float32)
    out2 = jax.block_until_ready(network_forward(x2, w32, b32, block_b=1024))
    ref2 = reference_forward(x2, params)
    assert out2.shape == (B2, DIMS[-1]), out2.shape
    assert jnp.allclose(out2, ref2, atol=1e-4, rtol=1e-4), "large-batch mismatch vs reference"

    print("KERNEL_OK")
</pallas_src>

<mosaic_0001>
module attributes {stable_mosaic.version = 11 : i64} {
  func.func @mlp_kernel(%arg0: i32, %arg1: memref<8x4xf32, #tpu.memory_space<vmem>>, %arg2: memref<768x128xf32, #tpu.memory_space<vmem>>, %arg3: memref<48x128xf32, #tpu.memory_space<vmem>>, %arg4: memref<8x8xf32, #tpu.memory_space<vmem>>) attributes {dimension_semantics = [#tpu.dimension_semantics<parallel>], iteration_bounds = array<i64: 1>, scalar_prefetch = 0 : i64, scratch_operands = 0 : i64, tpu.core_type = #tpu.core_type<tc>, window_params = [{transform_indices = @transform_0, window_bounds = array<i64: 8, 4>}, {pipeline_mode = #tpu.pipeline_mode<synchronous>, transform_indices = @transform_1, window_bounds = array<i64: 768, 128>}, {pipeline_mode = #tpu.pipeline_mode<synchronous>, transform_indices = @transform_2, window_bounds = array<i64: 48, 128>}, {transform_indices = @transform_3, window_bounds = array<i64: 8, 8>}]} {
    %c0 = arith.constant 0 : index
    %c0_0 = arith.constant 0 : index
    %0 = vector.load %arg1[%c0, %c0_0] : memref<8x4xf32, #tpu.memory_space<vmem>>, vector<8x4xf32>
    %1 = vector.extract_strided_slice %0 {offsets = [0, 0], sizes = [8, 1], strides = [1, 1]} : vector<8x4xf32> to vector<8x1xf32>
    %c0_1 = arith.constant 0 : index
    %c0_2 = arith.constant 0 : index
    %2 = vector.load %arg2[%c0_1, %c0_2] : memref<768x128xf32, #tpu.memory_space<vmem>>, vector<1x128xf32>
    %3 = vector.broadcast %1 : vector<8x1xf32> to vector<8x128xf32>
    %4 = vector.broadcast %2 : vector<1x128xf32> to vector<8x128xf32>
    %5 = arith.mulf %3, %4 : vector<8x128xf32>
    %6 = vector.extract_strided_slice %0 {offsets = [0, 1], sizes = [8, 1], strides = [1, 1]} : vector<8x4xf32> to vector<8x1xf32>
    %c1 = arith.constant 1 : index
    %c0_3 = arith.constant 0 : index
    %7 = vector.load %arg2[%c1, %c0_3] : memref<768x128xf32, #tpu.memory_space<vmem>>, vector<1x128xf32>
    %8 = vector.broadcast %6 : vector<8x1xf32> to vector<8x128xf32>
    %9 = vector.broadcast %7 : vector<1x128xf32> to vector<8x128xf32>
    %10 = arith.mulf %8, %9 : vector<8x128xf32>
    %11 = arith.addf %5, %10 : vector<8x128xf32>
    %12 = vector.extract_strided_slice %0 {offsets = [0, 2], sizes = [8, 1], strides = [1, 1]} : vector<8x4xf32> to vector<8x1xf32>
    %c2 = arith.constant 2 : index
    %c0_4 = arith.constant 0 : index
    %13 = vector.load %arg2[%c2, %c0_4] : memref<768x128xf32, #tpu.memory_space<vmem>>, vector<1x128xf32>
    %14 = vector.broadcast %12 : vector<8x1xf32> to vector<8x128xf32>
    %15 = vector.broadcast %13 : vector<1x128xf32> to vector<8x128xf32>
    %16 = arith.mulf %14, %15 : vector<8x128xf32>
    %17 = arith.addf %11, %16 : vector<8x128xf32>
    %18 = vector.extract_strided_slice %0 {offsets = [0, 3], sizes = [8, 1], strides = [1, 1]} : vector<8x4xf32> to vector<8x1xf32>
    %c3 = arith.constant 3 : index
    %c0_5 = arith.constant 0 : index
    %19 = vector.load %arg2[%c3, %c0_5] : memref<768x128xf32, #tpu.memory_space<vmem>>, vector<1x128xf32>
    %20 = vector.broadcast %18 : vector<8x1xf32> to vector<8x128xf32>
    %21 = vector.broadcast %19 : vector<1x128xf32> to vector<8x128xf32>
    %22 = arith.mulf %20, %21 : vector<8x128xf32>
    %23 = arith.addf %17, %22 : vector<8x128xf32>
    %c0_6 = arith.constant 0 : index
    %c0_7 = arith.constant 0 : index
    %24 = vector.load %arg3[%c0_6, %c0_7] : memref<48x128xf32, #tpu.memory_space<vmem>>, vector<1x128xf32>
    %25 = vector.broadcast %24 : vector<1x128xf32> to vector<8x128xf32>
    %26 = arith.addf %23, %25 : vector<8x128xf32>
    %cst = arith.constant 0.000000e+00 : f32
    %27 = vector.broadcast %cst : f32 to vector<8x128xf32>
    %28 = arith.maximumf %26, %27 : vector<8x128xf32>
    %c128 = arith.constant 128 : index
    %c0_8 = arith.constant 0 : index
    %29 = vector.load %arg2[%c128, %c0_8] : memref<768x128xf32, #tpu.memory_space<vmem>>, vector<128x128xf32>
    %c8 = arith.constant 8 : index
    %c0_9 = arith.constant 0 : index
    %30 = vector.load %arg3[%c8, %c0_9] : memref<48x128xf32, #tpu.memory_space<vmem>>, vector<1x128xf32>
    %cst_10 = arith.constant dense<0.000000e+00> : vector<8x128xf32>
    %31 = tpu.matmul %28, %29, %cst_10 {dimension_numbers = #tpu.dot_dimension_numbers<[1], [0], [0], [1], [0, 0, 1, 1], [], []>} : vector<8x128xf32>, vector<128x128xf32>, vector<8x128xf32> -> vector<8x128xf32>
    %32 = vector.broadcast %30 : vector<1x128xf32> to vector<8x128xf32>
    %33 = arith.addf %31, %32 : vector<8x128xf32>
    %cst_11 = arith.constant 0.000000e+00 : f32
    %34 = vector.broadcast %cst_11 : f32 to vector<8x128xf32>
    %35 = arith.maximumf %33, %34 : vector<8x128xf32>
    %c256 = arith.constant 256 : index
    %c0_12 = arith.constant 0 : index
    %36 = vector.load %arg2[%c256, %c0_12] : memref<768x128xf32, #tpu.memory_space<vmem>>, vector<128x128xf32>
    %c16 = arith.constant 16 : index
    %c0_13 = arith.constant 0 : index
    %37 = vector.load %arg3[%c16, %c0_13] : memref<48x128xf32, #tpu.memory_space<vmem>>, vector<1x128xf32>
    %cst_14 = arith.constant dense<0.000000e+00> : vector<8x128xf32>
    %38 = tpu.matmul %35, %36, %cst_14 {dimension_numbers = #tpu.dot_dimension_numbers<[1], [0], [0], [1], [0, 0, 1, 1], [], []>} : vector<8x128xf32>, vector<128x128xf32>, vector<8x128xf32> -> vector<8x128xf32>
    %39 = vector.broadcast %37 : vector<1x128xf32> to vector<8x128xf32>
    %40 = arith.addf %38, %39 : vector<8x128xf32>
    %cst_15 = arith.constant 0.000000e+00 : f32
    %41 = vector.broadcast %cst_15 : f32 to vector<8x128xf32>
    %42 = arith.maximumf %40, %41 : vector<8x128xf32>
    %c384 = arith.constant 384 : index
    %c0_16 = arith.constant 0 : index
    %43 = vector.load %arg2[%c384, %c0_16] : memref<768x128xf32, #tpu.memory_space<vmem>>, vector<128x128xf32>
    %c24 = arith.constant 24 : index
    %c0_17 = arith.constant 0 : index
    %44 = vector.load %arg3[%c24, %c0_17] : memref<48x128xf32, #tpu.memory_space<vmem>>, vector<1x128xf32>
    %cst_18 = arith.constant dense<0.000000e+00> : vector<8x128xf32>
    %45 = tpu.matmul %42, %43, %cst_18 {dimension_numbers = #tpu.dot_dimension_numbers<[1], [0], [0], [1], [0, 0, 1, 1], [], []>} : vector<8x128xf32>, vector<128x128xf32>, vector<8x128xf32> -> vector<8x128xf32>
    %46 = vector.broadcast %44 : vector<1x128xf32> to vector<8x128xf32>
    %47 = arith.addf %45, %46 : vector<8x128xf32>
    %cst_19 = arith.constant 0.000000e+00 : f32
    %48 = vector.broadcast %cst_19 : f32 to vector<8x128xf32>
    %49 = arith.maximumf %47, %48 : vector<8x128xf32>
    %c512 = arith.constant 512 : index
    %c0_20 = arith.constant 0 : index
    %50 = vector.load %arg2[%c512, %c0_20] : memref<768x128xf32, #tpu.memory_space<vmem>>, vector<128x128xf32>
    %c32 = arith.constant 32 : index
    %c0_21 = arith.constant 0 : index
    %51 = vector.load %arg3[%c32, %c0_21] : memref<48x128xf32, #tpu.memory_space<vmem>>, vector<1x128xf32>
    %cst_22 = arith.constant dense<0.000000e+00> : vector<8x128xf32>
    %52 = tpu.matmul %49, %50, %cst_22 {dimension_numbers = #tpu.dot_dimension_numbers<[1], [0], [0], [1], [0, 0, 1, 1], [], []>} : vector<8x128xf32>, vector<128x128xf32>, vector<8x128xf32> -> vector<8x128xf32>
    %53 = vector.broadcast %51 : vector<1x128xf32> to vector<8x128xf32>
    %54 = arith.addf %52, %53 : vector<8x128xf32>
    %cst_23 = arith.constant 0.000000e+00 : f32
    %55 = vector.broadcast %cst_23 : f32 to vector<8x128xf32>
    %56 = arith.maximumf %54, %55 : vector<8x128xf32>
    %c640 = arith.constant 640 : index
    %c0_24 = arith.constant 0 : index
    %57 = vector.load %arg2[%c640, %c0_24] : memref<768x128xf32, #tpu.memory_space<vmem>>, vector<128x128xf32>
    %c40 = arith.constant 40 : index
    %c0_25 = arith.constant 0 : index
    %58 = vector.load %arg3[%c40, %c0_25] : memref<48x128xf32, #tpu.memory_space<vmem>>, vector<1x128xf32>
    %cst_26 = arith.constant dense<0.000000e+00> : vector<8x128xf32>
    %59 = tpu.matmul %56, %57, %cst_26 {dimension_numbers = #tpu.dot_dimension_numbers<[1], [0], [0], [1], [0, 0, 1, 1], [], []>} : vector<8x128xf32>, vector<128x128xf32>, vector<8x128xf32> -> vector<8x128xf32>
    %60 = vector.broadcast %58 : vector<1x128xf32> to vector<8x128xf32>
    %61 = arith.addf %59, %60 : vector<8x128xf32>
    %62 = vector.extract_strided_slice %61 {offsets = [0, 0], sizes = [8, 8], strides = [1, 1]} : vector<8x128xf32> to vector<8x8xf32>
    %c0_27 = arith.constant 0 : index
    %c0_28 = arith.constant 0 : index
    %63 = vector.load %arg4[%c0_27, %c0_28] : memref<8x8xf32, #tpu.memory_space<vmem>>, vector<8x8xf32>
    tpu.vector_store %arg4[%c0_27, %c0_28], %62 {strides = array<i32>} : memref<8x8xf32, #tpu.memory_space<vmem>>, vector<8x8xf32>,
    return
  }
  func.func @transform_0(%arg0: i32) -> (i32, i32) {
    %c0_i32 = arith.constant 0 : i32
    %c0_i32_0 = arith.constant 0 : i32
    return %arg0, %c0_i32 : i32, i32
  }
  func.func @transform_1(%arg0: i32) -> (i32, i32) {
    %c0_i32 = arith.constant 0 : i32
    %c0_i32_0 = arith.constant 0 : i32
    %c0_i32_1 = arith.constant 0 : i32
    return %c0_i32, %c0_i32_0 : i32, i32
  }
  func.func @transform_2(%arg0: i32) -> (i32, i32) {
    %c0_i32 = arith.constant 0 : i32
    %c0_i32_0 = arith.constant 0 : i32
    %c0_i32_1 = arith.constant 0 : i32
    return %c0_i32, %c0_i32_0 : i32, i32
  }
  func.func @transform_3(%arg0: i32) -> (i32, i32) {
    %c0_i32 = arith.constant 0 : i32
    %c0_i32_0 = arith.constant 0 : i32
    return %arg0, %c0_i32 : i32, i32
  }
}

</mosaic_0001>

<bundles_post_ra>
// kernel: network_forward.1
= control target key start
LH: loop header
LB: loop body
LE: loop exit
PB: predicated region body
PF: predicated region fallthrough
CT: control target
= control target key end

     0   :  { %8 = vsyncpa [#allocation3], 0  ;;  %s1126_s0 = inlined_call_operand.vmem [shape: f32[8,4], index: 0, kind: input, shape index: {}]   ;;  %s1127_s1 = inlined_call_operand.hbm [shape: f32[768,128], index: 1, kind: input, shape index: {}]   ;;  %s1128_s2 = inlined_call_operand.hbm [shape: f32[48,128], index: 2, kind: input, shape index: {}]   ;;  %s1129_s3 = inlined_call_operand.vmem [shape: f32[8,8], index: 3, kind: output, shape index: {}]  }
   0x1   :  { %9 = vsyncpa [#allocation5], 0  ;;  %s1015_s12 = smov [#allocation2]   ;;  %s967_s16 = scalar_lea.hbm %s1127_s1, 12288 }
   0x2   :  { %s17_s13 = sshll.u32 %s1015_s12, 4  ;;  %p968_p0 = scmp.ne.s32.totalorder %s1127_s1, %s967_s16  ;;  %s18_s13 = int_to_ptr.vmem [resolvable:$true] %s17_s13 }
   0x3   :  { %p971_p1 = scmp.lt.u32.totalorder %s967_s16, %s1127_s1 }
   0x5   :  { %p973_p2 = pnand %p971_p1, %p968_p0 }
   0x7   :  { %976 = shalt.err (!%p973_p2)
}
   0x8   :  { %s977_s21 = scalar_lea.vmem %s18_s13, 12288  ;;  %p982_p4 = scmp.lt.s32.totalorder %s18_s13, %s18_s13 }
   0x9   :  { %p978_p3 = scmp.ne.s32.totalorder %s18_s13, %s977_s21  ;;  %p983_p5 = scmp.lt.s32.totalorder %s977_s21, %s977_s21 }
   0xb   :  { %p984_p6 = por %p983_p5, %p982_p4 }
   0xd   :  { %p985_p7 = pnand %p984_p6, %p978_p3 }
   0xf   :  { %988 = shalt.err (!%p985_p7)
}
  0x10   :  { %s1016_s22 = smov 128   ;;  %s1017_s23 = smov 8  }
  0x11   :  { %23 = dma.hbm_to_vmem [thread:$0]  %s1127_s1, 12288, %s18_s13, [#allocation3], %s1016_s22, %s1016_s22, %s1017_s23  }
  0x12   :  { %s1018_s26 = smov [#allocation4]   ;;  %s989_s30 = scalar_lea.hbm %s1128_s2, 768 }
  0x13   :  { %s29_s27 = sshll.u32 %s1018_s26, 4  ;;  %p990_p8 = scmp.ne.s32.totalorder %s1128_s2, %s989_s30  ;;  %s30_s27 = int_to_ptr.vmem [resolvable:$true] %s29_s27 }
  0x14   :  { %p993_p9 = scmp.lt.u32.totalorder %s989_s30, %s1128_s2 }
  0x16   :  { %p995_p10 = pnand %p993_p9, %p990_p8 }
  0x18   :  { %998 = shalt.err (!%p995_p10)
}
  0x19   :  { %s999_s8 = scalar_lea.vmem %s30_s27, 768  ;;  %p1004_p12 = scmp.lt.s32.totalorder %s30_s27, %s30_s27 }
  0x1a   :  { %p1000_p11 = scmp.ne.s32.totalorder %s30_s27, %s999_s8  ;;  %p1005_p13 = scmp.lt.s32.totalorder %s999_s8, %s999_s8 }
  0x1c   :  { %p1006_p0 = por %p1005_p13, %p1004_p12 }
  0x1e   :  { %p1007_p1 = pnand %p1006_p0, %p1000_p11 }
  0x20   :  { %1010 = shalt.err (!%p1007_p1)
}
  0x21   :  { %35 = dma.hbm_to_vmem [thread:$0]  %s1128_s2, 768, %s30_s27, [#allocation5], %s1016_s22, %s1016_s22, %s1017_s23  }
  0x22   :  { %1011 = dma.done.wait [#allocation3], 12288  }
  0x23   :  { %1012 = vsyncadd [#allocation3], 4294955008 }
  0x24   :  { %1013 = dma.done.wait [#allocation5], 768  }
  0x25   :  { %1014 = vsyncadd [#allocation5], 4294966528  ;;  %v1019_v0 = vmov 0   ;;  %v1020_v1 = vmov 2   ;;  %v1021_v2 = vmov 0.0|0.0   ;;  %v42_v3 = vld [vmem:[%s1126_s0] sm:$0xff] }
  0x26   :  { %962 = vset.pattern.permute.xlu0 %v1019_v0  ;;  %964 = vset.pattern.permute.xlu1 %v1020_v1  ;;  %v94_v4 = vld [vmem:[#allocation2 + $0x80] sm:$0xff]  ;;  %v95_v5 = vld [vmem:[#allocation2 + $0x88] sm:$0xff]  ;;  %v96_v7 = vld [vmem:[#allocation2 + $0x90] sm:$0xff]  ;;  %v1022_v12 = vmov 1   ;;  %v1023_v13 = vmov 3   ;;  %vm1024_vm0 = vmmov 0  }
  0x27   :  { %831 = vmatprep.subr.bf16.mxu0 %v1021_v2  ;;  %855 = vmatprep.subr.bf16.mxu1 %v1021_v2  ;;  %v832_v6 = vpack.c.bf16 %v95_v5, %v94_v4  ;;  %v97_v8 = vld [vmem:[#allocation2 + $0x98] sm:$0xff]  ;;  %v98_v10 = vld [vmem:[#allocation2 + $0xa0] sm:$0xff]  ;;  %v99_v11 = vld [vmem:[#allocation2 + $0xa8] sm:$0xff]  ;;  %v1025_v20 = vmov 0.0   ;;  %vm553_vm1 = vcmask 64512  }
  0x28   :  { %46 = vperm.xlu0 %962, %v42_v3   ;;  %67 = vperm.xlu1 %964, %v42_v3   ;;  %v835_v9 = vpack.c.bf16 %v97_v8, %v96_v7  ;;  %v838_v14 = vpack.c.bf16 %v99_v11, %v98_v10  ;;  %v100_v15 = vld [vmem:[#allocation2 + $0xb0] sm:$0xff]  ;;  %v101_v16 = vld [vmem:[#allocation2 + $0xb8] sm:$0xff]  ;;  %v102_v18 = vld [vmem:[#allocation2 + $0xc0] sm:$0xff] }
  0x29   :  { %833 = vmatpush3.bf16.msra.mxu0 %v832_v6  ;;  %v841_v17 = vpack.c.bf16 %v101_v16, %v100_v15  ;;  %v103_v19 = vld [vmem:[#allocation2 + $0xc8] sm:$0xff]  ;;  %688 = vmatprep.mubr.msk.f32.mxu0 %vm1024_vm0, %v1025_v20  ;;  %v104_v22 = vld [vmem:[#allocation2 + $0xd0] sm:$0xff]  ;;  %v105_v23 = vld [vmem:[#allocation2 + $0xd8] sm:$0xff] }
  0x2a   :  { %834 = vmatprep.subr.bf16.mxu0 %v1021_v2  ;;  %723 = vmatprep.mubr.msk.f32.mxu1 %vm1024_vm0, %v1025_v20  ;;  %v844_v21 = vpack.c.bf16 %v103_v19, %v102_v18  ;;  %v186_v24 = vld [vmem:[#allocation2 + $0x100] sm:$0xff]  ;;  %v187_v25 = vld [vmem:[#allocation2 + $0x108] sm:$0xff]  ;;  %v188_v26 = vld [vmem:[#allocation2 + $0x110] sm:$0xff]  ;;  %v847_v27 = vpack.c.bf16 %v105_v23, %v104_v22 }
  0x2b   :  { %v856_v28 = vpack.c.bf16 %v187_v25, %v186_v24  ;;  %v189_v29 = vld [vmem:[#allocation2 + $0x118] sm:$0xff]  ;;  %v106_v30 = vld [vmem:[#allocation2 + $0xe0] sm:$0xff]  ;;  %v107_v31 = vld [vmem:[#allocation2 + $0xe8] sm:$0xff] }
  0x2c   :  { %963 = vset.pattern.permute.xlu0 %v1022_v12  ;;  %965 = vset.pattern.permute.xlu1 %v1023_v13  ;;  %v859_v32 = vpack.c.bf16 %v189_v29, %v188_v26  ;;  %v190_v33 = vld [vmem:[#allocation2 + $0x120] sm:$0xff]  ;;  %v191_v34 = vld [vmem:[#allocation2 + $0x128] sm:$0xff]  ;;  %v850_v35 = vpack.c.bf16 %v107_v31, %v106_v30  ;;  %v108_v36 = vld [vmem:[#allocation2 + $0xf0] sm:$0xff] }
  0x2d   :  { %56 = vperm.xlu0 %963, %v42_v3   ;;  %78 = vperm.xlu1 %965, %v42_v3   ;;  %v109_v37 = vld [vmem:[#allocation2 + $0xf8] sm:$0xff]  ;;  %v862_v38 = vpack.c.bf16 %v191_v34, %v190_v33  ;;  %v192_v39 = vld [vmem:[#allocation2 + $0x130] sm:$0xff]  ;;  %v194_v43 = vld [vmem:[#allocation2 + $0x140] sm:$0xff] }
  0x2e   :  { %836 = vmatpush3.bf16.msra.mxu0 %v835_v9  ;;  %857 = vmatpush3.bf16.msra.mxu1 %v856_v28  ;;  %v193_v40 = vld [vmem:[#allocation2 + $0x138] sm:$0xff]  ;;  %v853_v41 = vpack.c.bf16 %v109_v37, %v108_v36  ;;  %v195_v44 = vld [vmem:[#allocation2 + $0x148] sm:$0xff]  ;;  %v196_v46 = vld [vmem:[#allocation2 + $0x150] sm:$0xff] }
  0x2f   :  { %837 = vmatprep.subr.bf16.mxu0 %v1021_v2  ;;  %858 = vmatprep.subr.bf16.mxu1 %v1021_v2  ;;  %v865_v42 = vpack.c.bf16 %v193_v40, %v192_v39  ;;  %v868_v45 = vpack.c.bf16 %v195_v44, %v194_v43  ;;  %v197_v47 = vld [vmem:[#allocation2 + $0x158] sm:$0xff]  ;;  %v198_v49 = vld [vmem:[#allocation2 + $0x160] sm:$0xff]  ;;  %v199_v50 = vld [vmem:[#allocation2 + $0x168] sm:$0xff] }
  0x30   :  { %v871_v48 = vpack.c.bf16 %v197_v47, %v196_v46  ;;  %v874_v51 = vpack.c.bf16 %v199_v50, %v198_v49  ;;  %v561_v54 = vld [vmem:[#allocation2] ss:$0 sm:$0xff]  ;;  %v562_v55 = vld [vmem:[#allocation2 + $0x1] ss:$0 sm:$0xff]  ;;  %v563_v56 = vld [vmem:[#allocation2 + $0x2] ss:$0 sm:$0xff] }
  0x31   :  { %966 = vset.pattern.permute.xlu0 %v1023_v13  ;;  %v564_v58 = vld [vmem:[#allocation2 + $0x3] ss:$0 sm:$0xff]  ;;  %v565_v3 = vld [vmem:[#allocation4] ss:$0 sm:$0xff]  ;;  %v200_v7 = vld [vmem:[#allocation2 + $0x170] sm:$0xff] }
  0x32   :  { %839 = vmatpush3.bf16.msra.mxu0 %v838_v14  ;;  %860 = vmatpush3.bf16.msra.mxu1 %v859_v32  ;;  %v201_v8 = vld [vmem:[#allocation2 + $0x178] sm:$0xff]  ;;  %v278_v10 = vld [vmem:[#allocation2 + $0x180] sm:$0xff]  ;;  %v279_v11 = vld [vmem:[#allocation2 + $0x188] sm:$0xff] }
  0x33   :  { %840 = vmatprep.subr.bf16.mxu0 %v1021_v2  ;;  %861 = vmatprep.subr.bf16.mxu1 %v1021_v2  ;;  %v877_v9 = vpack.c.bf16 %v201_v8, %v200_v7  ;;  %v280_v12 = vld [vmem:[#allocation2 + $0x190] sm:$0xff]  ;;  %v880_v13 = vpack.c.bf16 %v279_v11, %v278_v10  ;;  %v281_v14 = vld [vmem:[#allocation2 + $0x198] sm:$0xff]  ;;  %v282_v16 = vld [vmem:[#allocation2 + $0x1a0] sm:$0xff] }
  0x34   :  { %v883_v15 = vpack.c.bf16 %v281_v14, %v280_v12  ;;  %v284_v19 = vld [vmem:[#allocation2 + $0x1b0] sm:$0xff]  ;;  %v286_v23 = vld [vmem:[#allocation2 + $0x1c0] sm:$0xff]  ;;  %v287_v24 = vld [vmem:[#allocation2 + $0x1c8] sm:$0xff] }
  0x35   :  { %v892_v25 = vpack.c.bf16 %v287_v24, %v286_v23  ;;  %v288_v26 = vld [vmem:[#allocation2 + $0x1d0] sm:$0xff]  ;;  %v290_v29 = vld [vmem:[#allocation2 + $0x1e0] sm:$0xff]  ;;  %v291_v30 = vld [vmem:[#allocation2 + $0x1e8] sm:$0xff] }
  0x36   :  { %842 = vmatpush3.bf16.msra.mxu0 %v841_v17  ;;  %863 = vmatpush3.bf16.msra.mxu1 %v862_v38  ;;  %v283_v17 = vld [vmem:[#allocation2 + $0x1a8] sm:$0xff]  ;;  %v898_v31 = vpack.c.bf16 %v291_v30, %v290_v29  ;;  %v292_v37 = vld [vmem:[#allocation2 + $0x1f0] sm:$0xff]  ;;  %v293_v38 = vld [vmem:[#allocation2 + $0x1f8] sm:$0xff] }
  0x37   :  { %843 = vmatprep.subr.bf16.mxu0 %v1021_v2  ;;  %864 = vmatprep.subr.bf16.mxu1 %v1021_v2  ;;  %v886_v18 = vpack.c.bf16 %v283_v17, %v282_v16  ;;  %v566_v32 = vld [vmem:[#allocation4 + $0x8] ss:$0 sm:$0xff]  ;;  %v901_v39 = vpack.c.bf16 %v293_v38, %v292_v37  ;;  %v370_v40 = vld [vmem:[#allocation2 + $0x200] sm:$0xff]  ;;  %v373_v44 = vld [vmem:[#allocation2 + $0x218] sm:$0xff] }
  0x38   :  { %v374_v46 = vld [vmem:[#allocation2 + $0x220] sm:$0xff]  ;;  %v375_v47 = vld [vmem:[#allocation2 + $0x228] sm:$0xff]  ;;  %v376_v49 = vld [vmem:[#allocation2 + $0x230] sm:$0xff] }
  0x39   :  { %v377_v50 = vld [vmem:[#allocation2 + $0x238] sm:$0xff]  ;;  %v463_v7 = vld [vmem:[#allocation2 + $0x288] sm:$0xff]  ;;  %v464_v8 = vld [vmem:[#allocation2 + $0x290] sm:$0xff] }
  0x3a   :  { %845 = vmatpush3.bf16.msra.mxu0 %v844_v21  ;;  %866 = vmatpush3.bf16.msra.mxu1 %v865_v42  ;;  %v285_v21 = vld [vmem:[#allocation2 + $0x1b8] sm:$0xff]  ;;  %v372_v42 = vld [vmem:[#allocation2 + $0x210] sm:$0xff]  ;;  %v466_v12 = vld [vmem:[#allocation2 + $0x2a0] sm:$0xff] }
  0x3b   :  { %846 = vmatprep.subr.bf16.mxu0 %v1021_v2  ;;  %867 = vmatprep.subr.bf16.mxu1 %v1021_v2  ;;  %v889_v22 = vpack.c.bf16 %v285_v21, %v284_v19  ;;  %v465_v10 = vld [vmem:[#allocation2 + $0x298] sm:$0xff]  ;;  %v470_v17 = vld [vmem:[#allocation2 + $0x2c0] sm:$0xff]  ;;  %v472_v21 = vld [vmem:[#allocation2 + $0x2d0] sm:$0xff] }
  0x3c   :  { %v931_v11 = vpack.c.bf16 %v465_v10, %v464_v8  ;;  %v474_v24 = vld [vmem:[#allocation2 + $0x2e0] sm:$0xff] }
  0x3e   :  { %848 = vmatpush3.bf16.msra.mxu0 %v847_v27  ;;  %869 = vmatpush3.bf16.msra.mxu1 %v868_v45  ;;  %v289_v27 = vld [vmem:[#allocation2 + $0x1d8] sm:$0xff]  ;;  %v907_v45 = vpack.c.bf16 %v373_v44, %v372_v42 }
  0x3f   :  { %849 = vmatprep.subr.bf16.mxu0 %v1021_v2  ;;  %870 = vmatprep.subr.bf16.mxu1 %v1021_v2  ;;  %v895_v28 = vpack.c.bf16 %v289_v27, %v288_v26  ;;  %v568_v27 = vld [vmem:[#allocation4 + $0x18] ss:$0 sm:$0xff] }
  0x42   :  { %851 = vmatpush3.bf16.msra.mxu0 %v850_v35  ;;  %872 = vmatpush3.bf16.msra.mxu1 %v871_v48  ;;  %v910_v48 = vpack.c.bf16 %v375_v47, %v374_v46 }
  0x43   :  { %852 = vmatprep.subr.bf16.mxu0 %v1021_v2  ;;  %873 = vmatprep.subr.bf16.mxu1 %v1021_v2 }
  0x46   :  { %854 = vmatpush3.bf16.msra.mxu0 %v853_v41  ;;  %875 = vmatpush3.bf16.msra.mxu1 %v874_v51  ;;  %v371_v41 = vld [vmem:[#allocation2 + $0x208] sm:$0xff]  ;;  %v913_v51 = vpack.c.bf16 %v377_v50, %v376_v49 }
  0x47   :  { %879 = vmatprep.subr.bf16.mxu0 %v1021_v2  ;;  %876 = vmatprep.subr.bf16.mxu1 %v1021_v2  ;;  %v904_v43 = vpack.c.bf16 %v371_v41, %v370_v40  ;;  %v570_v40 = vld [vmem:[#allocation4 + $0x28] ss:$0 sm:$0xff] }
  0x4a   :  { %878 = vmatpush3.bf16.msra.mxu1 %v877_v9 }
  0x4b   :  { %903 = vmatprep.subr.bf16.mxu1 %v1021_v2 }
  0xa7   :  { %v47_v52 = vpop.permute.xlu0 %46  ;;  %v68_v53 = vpop.permute.xlu1 %67 }
  0xa8   :  { %v53_v60 = vmul.f32 %v561_v54, %v47_v52  ;;  %v74_v62 = vmul.f32 %v563_v56, %v68_v53  ;;  %v378_v52 = vld [vmem:[#allocation2 + $0x240] sm:$0xff]  ;;  %v379_v53 = vld [vmem:[#allocation2 + $0x248] sm:$0xff]  ;;  %v381_v56 = vld [vmem:[#allocation2 + $0x258] sm:$0xff] }
  0xa9   :  { %v916_v54 = vpack.c.bf16 %v379_v53, %v378_v52 }
  0xac   :  { %v57_v57 = vpop.permute.xlu0 %56  ;;  %v79_v59 = vpop.permute.xlu1 %78 }
  0xad   :  { %v63_v61 = vmul.f32 %v562_v55, %v57_v57  ;;  %v85_v0 = vmul.f32 %v564_v58, %v79_v59  ;;  %v380_v55 = vld [vmem:[#allocation2 + $0x250] sm:$0xff]  ;;  %v382_v58 = vld [vmem:[#allocation2 + $0x260] sm:$0xff]  ;;  %v383_v59 = vld [vmem:[#allocation2 + $0x268] sm:$0xff] }
  0xae   :  { %v919_v57 = vpack.c.bf16 %v381_v56, %v380_v55 }
  0xaf   :  { %v64_v63 = vadd.f32 %v63_v61, %v53_v60  ;;  %v922_v60 = vpack.c.bf16 %v383_v59, %v382_v58  ;;  %v567_v61 = vld [vmem:[#allocation4 + $0x10] ss:$0 sm:$0xff] }
  0xb1   :  { %v75_v1 = vadd.f32 %v74_v62, %v64_v63 }
  0xb3   :  { %v86_v4 = vadd.f32 %v85_v0, %v75_v1 }
  0xb5   :  { %v92_v5 = vadd.f32 %v565_v3, %v86_v4  ;;  %v384_v3 = vld [vmem:[#allocation2 + $0x270] sm:$0xff]  ;;  %v385_v4 = vld [vmem:[#allocation2 + $0x278] sm:$0xff] }
  0xb7   :  { %v93_v6 = vmax.f32 %v92_v5, 0.0  ;;  %v925_v5 = vpack.c.bf16 %v385_v4, %v384_v3 }
  0xb9   :  { %689 = vmatmul.mubr.f32.vlgmr.msra.gmra.mrb[0].mxu0 %v93_v6  ;;  %v462_v6 = vld [vmem:[#allocation2 + $0x280] sm:$0xff] }
  0xba   :  { %758 = vmatprep.mubr.msk.f32.mxu0 %vm1024_vm0, %v1025_v20  ;;  %881 = vmatpush3.bf16.msra.mxu0 %v880_v13  ;;  %v928_v9 = vpack.c.bf16 %v463_v7, %v462_v6  ;;  %v467_v13 = vld [vmem:[#allocation2 + $0x2a8] sm:$0xff] }
  0xbb   :  { %882 = vmatprep.subr.bf16.mxu0 %v1021_v2  ;;  %v934_v14 = vpack.c.bf16 %v467_v13, %v466_v12 }
  0xbe   :  { %884 = vmatpush3.bf16.msra.mxu0 %v883_v15  ;;  %v469_v15 = vld [vmem:[#allocation2 + $0x2b8] sm:$0xff] }
  0xbf   :  { %885 = vmatprep.subr.bf16.mxu0 %v1021_v2 }
  0xc2   :  { %887 = vmatpush3.bf16.msra.mxu0 %v886_v18  ;;  %v471_v18 = vld [vmem:[#allocation2 + $0x2c8] sm:$0xff] }
  0xc3   :  { %888 = vmatprep.subr.bf16.mxu0 %v1021_v2  ;;  %v940_v19 = vpack.c.bf16 %v471_v18, %v470_v17 }
  0xc6   :  { %890 = vmatpush3.bf16.msra.mxu0 %v889_v22  ;;  %v473_v22 = vld [vmem:[#allocation2 + $0x2d8] sm:$0xff] }
  0xc7   :  { %891 = vmatprep.subr.bf16.mxu0 %v1021_v2  ;;  %v943_v23 = vpack.c.bf16 %v473_v22, %v472_v21 }
  0xca   :  { %893 = vmatpush3.bf16.msra.mxu0 %v892_v25  ;;  %v475_v25 = vld [vmem:[#allocation2 + $0x2e8] sm:$0xff] }
  0xcb   :  { %894 = vmatprep.subr.bf16.mxu0 %v1021_v2  ;;  %v946_v26 = vpack.c.bf16 %v475_v25, %v474_v24 }
  0xce   :  { %896 = vmatpush3.bf16.msra.mxu0 %v895_v28 }
  0xcf   :  { %897 = vmatprep.subr.bf16.mxu0 %v1021_v2 }
  0xd2   :  { %899 = vmatpush3.bf16.msra.mxu0 %v898_v31 }
  0xd3   :  { %900 = vmatprep.subr.bf16.mxu0 %v1021_v2 }
  0xd6   :  { %902 = vmatpush3.bf16.msra.mxu0 %v901_v39 }
  0xd7   :  { %927 = vmatprep.subr.bf16.mxu0 %v1021_v2 }
 0x18c   :  { %v181_v33 = vpop.f32.mrb[0].mxu0 }
 0x18d   :  { %v182_v34 = vadd.f32 %v566_v32, %v181_v33  ;;  %v690_v35 = vpop.f32.mrb[1].mxu0  ;;  %v476_v32 = vld [vmem:[#allocation2 + $0x2f0] sm:$0xff]  ;;  %v477_v33 = vld [vmem:[#allocation2 + $0x2f8] sm:$0xff] }
 0x18e   :  { %v569_v35 = vld [vmem:[#allocation4 + $0x20] ss:$0 sm:$0xff] }
 0x18f   :  { %v185_v36 = vmax.f32 %v182_v34, 0.0  ;;  %v949_v34 = vpack.c.bf16 %v477_v33, %v476_v32 }
 0x191   :  { %724 = vmatmul.mubr.f32.vlgmr.msra.gmra.mrb[0].mxu1 %v185_v36 }
 0x192   :  { %793 = vmatprep.mubr.msk.f32.mxu1 %vm1024_vm0, %v1025_v20  ;;  %905 = vmatpush3.bf16.msra.mxu1 %v904_v43 }
 0x193   :  { %906 = vmatprep.subr.bf16.mxu1 %v1021_v2 }
 0x196   :  { %908 = vmatpush3.bf16.msra.mxu1 %v907_v45 }
 0x197   :  { %909 = vmatprep.subr.bf16.mxu1 %v1021_v2 }
 0x19a   :  { %911 = vmatpush3.bf16.msra.mxu1 %v910_v48 }
 0x19b   :  { %912 = vmatprep.subr.bf16.mxu1 %v1021_v2 }
 0x19e   :  { %914 = vmatpush3.bf16.msra.mxu1 %v913_v51 }
 0x19f   :  { %915 = vmatprep.subr.bf16.mxu1 %v1021_v2 }
 0x1a2   :  { %917 = vmatpush3.bf16.msra.mxu1 %v916_v54 }
 0x1a3   :  { %918 = vmatprep.subr.bf16.mxu1 %v1021_v2 }
 0x1a6   :  { %920 = vmatpush3.bf16.msra.mxu1 %v919_v57 }
 0x1a7   :  { %921 = vmatprep.subr.bf16.mxu1 %v1021_v2 }
 0x1aa   :  { %923 = vmatpush3.bf16.msra.mxu1 %v922_v60 }
 0x1ab   :  { %924 = vmatprep.subr.bf16.mxu1 %v1021_v2 }
 0x1ae   :  { %926 = vmatpush3.bf16.msra.mxu1 %v925_v5 }
 0x264   :  { %v273_v62 = vpop.f32.mrb[0].mxu1 }
 0x265   :  { %v274_v63 = vadd.f32 %v567_v61, %v273_v62  ;;  %v725_v0 = vpop.f32.mrb[1].mxu1 }
 0x267   :  { %v277_v1 = vmax.f32 %v274_v63, 0.0 }
 0x269   :  { %759 = vmatmul.mubr.f32.vlgmr.msra.gmra.mrb[2].mxu0 %v277_v1 }
 0x26a   :  { %828 = vmatprep.mubr.msk.f32.mxu0 %vm1024_vm0, %v1025_v20  ;;  %929 = vmatpush3.bf16.msra.mxu0 %v928_v9  ;;  %v468_v20 = vld [vmem:[#allocation2 + $0x2b0] sm:$0xff] }
 0x26b   :  { %930 = vmatprep.subr.bf16.mxu0 %v1021_v2  ;;  %v937_v16 = vpack.c.bf16 %v469_v15, %v468_v20 }
 0x26e   :  { %932 = vmatpush3.bf16.msra.mxu0 %v931_v11 }
 0x26f   :  { %933 = vmatprep.subr.bf16.mxu0 %v1021_v2 }
 0x272   :  { %935 = vmatpush3.bf16.msra.mxu0 %v934_v14 }
 0x273   :  { %936 = vmatprep.subr.bf16.mxu0 %v1021_v2 }
 0x276   :  { %938 = vmatpush3.bf16.msra.mxu0 %v937_v16 }
 0x277   :  { %939 = vmatprep.subr.bf16.mxu0 %v1021_v2 }
 0x27a   :  { %941 = vmatpush3.bf16.msra.mxu0 %v940_v19 }
 0x27b   :  { %942 = vmatprep.subr.bf16.mxu0 %v1021_v2 }
 0x27e   :  { %944 = vmatpush3.bf16.msra.mxu0 %v943_v23 }
 0x27f   :  { %945 = vmatprep.subr.bf16.mxu0 %v1021_v2 }
 0x282   :  { %947 = vmatpush3.bf16.msra.mxu0 %v946_v26 }
 0x283   :  { %948 = vmatprep.subr.bf16.mxu0 %v1021_v2 }
 0x286   :  { %950 = vmatpush3.bf16.msra.mxu0 %v949_v34 }
 0x33c   :  { %v365_v28 = vpop.f32.mrb[2].mxu0 }
 0x33d   :  { %v366_v29 = vadd.f32 %v568_v27, %v365_v28  ;;  %v760_v30 = vpop.f32.mrb[3].mxu0 }
 0x33f   :  { %v369_v31 = vmax.f32 %v366_v29, 0.0 }
 0x341   :  { %794 = vmatmul.mubr.f32.vlgmr.msra.gmra.mrb[2].mxu1 %v369_v31 }
 0x414   :  { %v457_v36 = vpop.f32.mrb[2].mxu1 }
 0x415   :  { %v458_v37 = vadd.f32 %v569_v35, %v457_v36  ;;  %v795_v38 = vpop.f32.mrb[3].mxu1 }
 0x417   :  { %v461_v39 = vmax.f32 %v458_v37, 0.0 }
 0x419   :  { %829 = vmatmul.mubr.f32.vlgmr.msra.gmra.mrb[4].mxu0 %v461_v39 }
 0x4ec   :  { %v549_v41 = vpop.f32.mrb[4].mxu0 }
 0x4ed   :  { %v550_v2 = vadd.f32 %v570_v40, %v549_v41  ;;  %v830_v42 = vpop.f32.mrb[5].mxu0 }
 0x4ef   :  { %554 = vst.msk [vmem:[%s1129_s3] sm:$0xff] %vm553_vm1, %v550_v2 }
 0x4f0   :  { %559 = vsyncpa [#allocation3], 1 }
 0x4f1   :  { %560 = vsyncpa [#allocation5], 1 }

</bundles_post_ra>
